<compile_context>
chip_gen: v6e
topology: v6e:2x2x1
jax: 0.10.0
libtpu: 0.0.40
codegen_flags: <defaults>
</compile_context>

<pallas_src>
import functools

import jax
import jax.numpy as jnp
from jax.experimental import pallas as pl
from jax.experimental.pallas import tpu as pltpu


# ----------------------------------------------------------------------------
# Fused kernel: entire MLP forward for one batch tile.
# ----------------------------------------------------------------------------
def _fused_mlp_kernel(*refs, num_hidden, output_dim):
    x_ref, c1_ref, c2_ref, w1x_ref, w1c1_ref, w1c2_ref, b1_ref = refs[:7]
    rest = refs[7:]
    hidden_refs = rest[: 2 * num_hidden]
    wro_ref, bro_ref, mean_ref, std_ref = rest[2 * num_hidden :]

    # Layer 1: big dot on the 784-wide slab (MXU) + two rank-1 VPU updates for
    # the conditioning scalars (replaces the 786-wide concat).
    h = jnp.dot(x_ref[...], w1x_ref[...], preferred_element_type=jnp.float32)
    h = h + c1_ref[...] * w1c1_ref[...] + c2_ref[...] * w1c2_ref[...] + b1_ref[...]
    h = jnp.maximum(h, 0.0)

    # Hidden layers (Linear + ReLU), all resident in VMEM / vregs.
    for l in range(num_hidden):
        w_ref = hidden_refs[2 * l]
        b_ref = hidden_refs[2 * l + 1]
        h = jnp.dot(h, w_ref[...], preferred_element_type=jnp.float32) + b_ref[...]
        h = jnp.maximum(h, 0.0)

    # Readout: single matmul, split mean / log-var with static in-kernel slices.
    y = jnp.dot(h, wro_ref[...], preferred_element_type=jnp.float32) + bro_ref[...]
    mean_ref[...] = y[:, :output_dim].astype(mean_ref.dtype)
    std_ref[...] = (1e-6 + jnp.exp(0.5 * y[:, output_dim:])).astype(std_ref.dtype)


# ----------------------------------------------------------------------------
# Wrapper: one pallas_call for the whole forward.
# ----------------------------------------------------------------------------
def _round_up(n, m):
    return ((n + m - 1) // m) * m


def fused_encoder_forward(X, c1, c2, params):
    B = X.shape[0]
    x = X.reshape(B, 28 * 28).astype(jnp.float32)       # X.view(-1, 28*28)
    c1 = c1.reshape(B, 1).astype(jnp.float32)
    c2 = c2.reshape(B, 1).astype(jnp.float32)

    w1x = params["w1x"]                                  # (784, H0)
    w1c1 = params["w1c1"].reshape(1, -1)                 # (1, H0)  -> row 784
    w1c2 = params["w1c2"].reshape(1, -1)                 # (1, H0)  -> row 785
    b1 = params["b1"].reshape(1, -1)                     # (1, H0)
    hidden = params["hidden"]                            # list of (w, b)
    w_ro = params["w_ro"]                                # (Hlast, 2*out)
    b_ro = params["b_ro"].reshape(1, -1)                 # (1, 2*out)

    Din = x.shape[1]
    H0 = w1x.shape[1]
    output_dim = w_ro.shape[1] // 2

    # Batch tiling: pad B up to a sublane multiple (8); tile with <= 512 rows
    # per grid step (bounded VMEM on all generations, incl. v7x's 64 MiB).
    bt = 512 if B > 512 else _round_up(max(B, 1), 8)
    padded_B = _round_up(B, bt)
    if padded_B != B:
        pad = padded_B - B
        x = jnp.pad(x, ((0, pad), (0, 0)))
        c1 = jnp.pad(c1, ((0, pad), (0, 0)))
        c2 = jnp.pad(c2, ((0, pad), (0, 0)))
    grid = (padded_B // bt,)

    def row_spec(cols):
        # Batch-tiled operand / output.
        return pl.BlockSpec((bt, cols), lambda i: (i, 0))

    def full_spec(shape):
        # Whole (small) weight / bias as one VMEM-resident block.
        return pl.BlockSpec(shape, lambda i: (0,) * len(shape))

    in_specs = [
        row_spec(Din), row_spec(1), row_spec(1),
        full_spec(w1x.shape), full_spec(w1c1.shape), full_spec(w1c2.shape),
        full_spec(b1.shape),
    ]
    operands = [x, c1, c2, w1x, w1c1, w1c2, b1]
    for (w, b) in hidden:
        b2 = b.reshape(1, -1)
        in_specs += [full_spec(w.shape), full_spec(b2.shape)]
        operands += [w, b2]
    in_specs += [full_spec(w_ro.shape), full_spec(b_ro.shape)]
    operands += [w_ro, b_ro]

    kernel = functools.partial(
        _fused_mlp_kernel, num_hidden=len(hidden), output_dim=output_dim
    )

    mean, stdev = pl.pallas_call(
        kernel,
        out_shape=(
            jax.ShapeDtypeStruct((padded_B, output_dim), jnp.float32),
            jax.ShapeDtypeStruct((padded_B, output_dim), jnp.float32),
        ),
        grid=grid,
        in_specs=in_specs,
        out_specs=(row_spec(output_dim), row_spec(output_dim)),
        compiler_params=pltpu.CompilerParams(dimension_semantics=("parallel",)),
    )(*operands)

    return mean[:B], stdev[:B]


encoder_mlp_conditional_forward = jax.jit(fused_encoder_forward)


# ----------------------------------------------------------------------------
# Parameter init (PyTorch-style uniform(-1/sqrt(fan_in), 1/sqrt(fan_in))).
# ----------------------------------------------------------------------------
def init_params(key, input_dim, hidden_dims, output_dim):
    dims = [input_dim + 2] + list(hidden_dims)           # module adds +2 for c1,c2

    def _linear(key, fan_in, fan_out):
        kw, kb = jax.random.split(key)
        bound = 1.0 / jnp.sqrt(fan_in)
        w = jax.random.uniform(kw, (fan_in, fan_out), jnp.float32, -bound, bound)
        b = jax.random.uniform(kb, (fan_out,), jnp.float32, -bound, bound)
        return w, b

    key, k1 = jax.random.split(key)
    w1, b1 = _linear(k1, dims[0], dims[1])               # (786, H0)
    params = {
        "w1x": w1[:input_dim],                           # (784, H0)
        "w1c1": w1[input_dim : input_dim + 1],           # (1, H0)
        "w1c2": w1[input_dim + 1 : input_dim + 2],       # (1, H0)
        "b1": b1,
        "hidden": [],
    }
    for i in range(1, len(hidden_dims)):
        key, kh = jax.random.split(key)
        params["hidden"].append(_linear(kh, dims[i], dims[i + 1]))
    key, kr = jax.random.split(key)
    w_ro, b_ro = _linear(kr, dims[-1], 2 * output_dim)
    params["w_ro"] = w_ro
    params["b_ro"] = b_ro
    return params


# ----------------------------------------------------------------------------
# Pure-JAX reference (for a correctness check against the fused kernel).
# ----------------------------------------------------------------------------
def _reference_forward(X, c1, c2, params):
    B = X.shape[0]
    x = X.reshape(B, 28 * 28)
    x = jnp.concatenate([x, c1.reshape(B, 1), c2.reshape(B, 1)], axis=-1)
    w1 = jnp.concatenate([params["w1x"], params["w1c1"], params["w1c2"]], axis=0)
    hp = jax.lax.Precision.HIGHEST
    x = jnp.maximum(jnp.dot(x, w1, precision=hp) + params["b1"], 0.0)
    for (w, b) in params["hidden"]:
        x = jnp.maximum(jnp.dot(x, w, precision=hp) + b, 0.0)
    y = jnp.dot(x, params["w_ro"], precision=hp) + params["b_ro"]
    out = params["w_ro"].shape[1] // 2
    return y[:, :out], 1e-6 + jnp.exp(0.5 * y[:, out:])


if __name__ == "__main__":
    key = jax.random.PRNGKey(0)
    k_param, k_x, k_c1, k_c2 = jax.random.split(key, 4)

    input_dim = 28 * 28          # forward hard-codes the 28*28 flattening
    hidden_dims = [128, 64]
    output_dim = 16
    batch = 4

    params = init_params(k_param, input_dim, hidden_dims, output_dim)

    X = jax.random.normal(k_x, (batch, 1, 28, 28), jnp.float32)   # NCHW
    c1 = jax.random.normal(k_c1, (batch,), jnp.float32)
    c2 = jax.random.normal(k_c2, (batch,), jnp.float32)

    mean, stdev = encoder_mlp_conditional_forward(X, c1, c2, params)
    jax.block_until_ready((mean, stdev))

    assert mean.shape == (batch, output_dim)
    assert stdev.shape == (batch, output_dim)
    assert bool(jnp.all(stdev > 0.0))

    ref_mean, ref_std = _reference_forward(X, c1, c2, params)
    assert bool(jnp.allclose(mean, ref_mean, rtol=1e-2, atol=1e-2))
    assert bool(jnp.allclose(stdev, ref_std, rtol=1e-2, atol=1e-2))

    print("KERNEL_OK")
</pallas_src>

<mosaic_0001>
module attributes {stable_mosaic.version = 11 : i64} {
  func.func @_fused_mlp_kernel(%arg0: i32, %arg1: memref<8x784xf32, #tpu.memory_space<vmem>>, %arg2: memref<8x1xf32, #tpu.memory_space<vmem>>, %arg3: memref<8x1xf32, #tpu.memory_space<vmem>>, %arg4: memref<784x128xf32, #tpu.memory_space<vmem>>, %arg5: memref<1x128xf32, #tpu.memory_space<vmem>>, %arg6: memref<1x128xf32, #tpu.memory_space<vmem>>, %arg7: memref<1x128xf32, #tpu.memory_space<vmem>>, %arg8: memref<128x64xf32, #tpu.memory_space<vmem>>, %arg9: memref<1x64xf32, #tpu.memory_space<vmem>>, %arg10: memref<64x32xf32, #tpu.memory_space<vmem>>, %arg11: memref<1x32xf32, #tpu.memory_space<vmem>>, %arg12: memref<8x16xf32, #tpu.memory_space<vmem>>, %arg13: memref<8x16xf32, #tpu.memory_space<vmem>>) attributes {dimension_semantics = [#tpu.dimension_semantics<parallel>], iteration_bounds = array<i64: 1>, scalar_prefetch = 0 : i64, scratch_operands = 0 : i64, tpu.core_type = #tpu.core_type<tc>, window_params = [{transform_indices = @transform_0, window_bounds = array<i64: 8, 784>}, {transform_indices = @transform_1, window_bounds = array<i64: 8, 1>}, {transform_indices = @transform_2, window_bounds = array<i64: 8, 1>}, {pipeline_mode = #tpu.pipeline_mode<synchronous>, transform_indices = @transform_3, window_bounds = array<i64: 784, 128>}, {pipeline_mode = #tpu.pipeline_mode<synchronous>, transform_indices = @transform_4, window_bounds = array<i64: 1, 128>}, {pipeline_mode = #tpu.pipeline_mode<synchronous>, transform_indices = @transform_5, window_bounds = array<i64: 1, 128>}, {pipeline_mode = #tpu.pipeline_mode<synchronous>, transform_indices = @transform_6, window_bounds = array<i64: 1, 128>}, {pipeline_mode = #tpu.pipeline_mode<synchronous>, transform_indices = @transform_7, window_bounds = array<i64: 128, 64>}, {pipeline_mode = #tpu.pipeline_mode<synchronous>, transform_indices = @transform_8, window_bounds = array<i64: 1, 64>}, {pipeline_mode = #tpu.pipeline_mode<synchronous>, transform_indices = @transform_9, window_bounds = array<i64: 64, 32>}, {pipeline_mode = #tpu.pipeline_mode<synchronous>, transform_indices = @transform_10, window_bounds = array<i64: 1, 32>}, {transform_indices = @transform_11, window_bounds = array<i64: 8, 16>}, {transform_indices = @transform_12, window_bounds = array<i64: 8, 16>}]} {
    %c0 = arith.constant 0 : index
    %c0_0 = arith.constant 0 : index
    %0 = vector.load %arg1[%c0, %c0_0] : memref<8x784xf32, #tpu.memory_space<vmem>>, vector<8x784xf32>
    %c0_1 = arith.constant 0 : index
    %c0_2 = arith.constant 0 : index
    %1 = vector.load %arg4[%c0_1, %c0_2] : memref<784x128xf32, #tpu.memory_space<vmem>>, vector<784x128xf32>
    %cst = arith.constant dense<0.000000e+00> : vector<8x128xf32>
    %2 = tpu.matmul %0, %1, %cst {dimension_numbers = #tpu.dot_dimension_numbers<[1], [0], [0], [1], [0, 0, 1, 1], [], []>} : vector<8x784xf32>, vector<784x128xf32>, vector<8x128xf32> -> vector<8x128xf32>
    %c0_3 = arith.constant 0 : index
    %c0_4 = arith.constant 0 : index
    %3 = vector.load %arg2[%c0_3, %c0_4] : memref<8x1xf32, #tpu.memory_space<vmem>>, vector<8x1xf32>
    %c0_5 = arith.constant 0 : index
    %c0_6 = arith.constant 0 : index
    %4 = vector.load %arg5[%c0_5, %c0_6] : memref<1x128xf32, #tpu.memory_space<vmem>>, vector<1x128xf32>
    %5 = vector.broadcast %3 : vector<8x1xf32> to vector<8x128xf32>
    %6 = vector.broadcast %4 : vector<1x128xf32> to vector<8x128xf32>
    %7 = arith.mulf %5, %6 : vector<8x128xf32>
    %8 = arith.addf %2, %7 : vector<8x128xf32>
    %c0_7 = arith.constant 0 : index
    %c0_8 = arith.constant 0 : index
    %9 = vector.load %arg3[%c0_7, %c0_8] : memref<8x1xf32, #tpu.memory_space<vmem>>, vector<8x1xf32>
    %c0_9 = arith.constant 0 : index
    %c0_10 = arith.constant 0 : index
    %10 = vector.load %arg6[%c0_9, %c0_10] : memref<1x128xf32, #tpu.memory_space<vmem>>, vector<1x128xf32>
    %11 = vector.broadcast %9 : vector<8x1xf32> to vector<8x128xf32>
    %12 = vector.broadcast %10 : vector<1x128xf32> to vector<8x128xf32>
    %13 = arith.mulf %11, %12 : vector<8x128xf32>
    %14 = arith.addf %8, %13 : vector<8x128xf32>
    %c0_11 = arith.constant 0 : index
    %c0_12 = arith.constant 0 : index
    %15 = vector.load %arg7[%c0_11, %c0_12] : memref<1x128xf32, #tpu.memory_space<vmem>>, vector<1x128xf32>
    %16 = vector.broadcast %15 : vector<1x128xf32> to vector<8x128xf32>
    %17 = arith.addf %14, %16 : vector<8x128xf32>
    %cst_13 = arith.constant 0.000000e+00 : f32
    %18 = vector.broadcast %cst_13 : f32 to vector<8x128xf32>
    %19 = arith.maximumf %17, %18 : vector<8x128xf32>
    %c0_14 = arith.constant 0 : index
    %c0_15 = arith.constant 0 : index
    %20 = vector.load %arg8[%c0_14, %c0_15] : memref<128x64xf32, #tpu.memory_space<vmem>>, vector<128x64xf32>
    %cst_16 = arith.constant dense<0.000000e+00> : vector<8x64xf32>
    %21 = tpu.matmul %19, %20, %cst_16 {dimension_numbers = #tpu.dot_dimension_numbers<[1], [0], [0], [1], [0, 0, 1, 1], [], []>} : vector<8x128xf32>, vector<128x64xf32>, vector<8x64xf32> -> vector<8x64xf32>
    %c0_17 = arith.constant 0 : index
    %c0_18 = arith.constant 0 : index
    %22 = vector.load %arg9[%c0_17, %c0_18] : memref<1x64xf32, #tpu.memory_space<vmem>>, vector<1x64xf32>
    %23 = vector.broadcast %22 : vector<1x64xf32> to vector<8x64xf32>
    %24 = arith.addf %21, %23 : vector<8x64xf32>
    %cst_19 = arith.constant 0.000000e+00 : f32
    %25 = vector.broadcast %cst_19 : f32 to vector<8x64xf32>
    %26 = arith.maximumf %24, %25 : vector<8x64xf32>
    %c0_20 = arith.constant 0 : index
    %c0_21 = arith.constant 0 : index
    %27 = vector.load %arg10[%c0_20, %c0_21] : memref<64x32xf32, #tpu.memory_space<vmem>>, vector<64x32xf32>
    %cst_22 = arith.constant dense<0.000000e+00> : vector<8x32xf32>
    %28 = tpu.matmul %26, %27, %cst_22 {dimension_numbers = #tpu.dot_dimension_numbers<[1], [0], [0], [1], [0, 0, 1, 1], [], []>} : vector<8x64xf32>, vector<64x32xf32>, vector<8x32xf32> -> vector<8x32xf32>
    %c0_23 = arith.constant 0 : index
    %c0_24 = arith.constant 0 : index
    %29 = vector.load %arg11[%c0_23, %c0_24] : memref<1x32xf32, #tpu.memory_space<vmem>>, vector<1x32xf32>
    %30 = vector.broadcast %29 : vector<1x32xf32> to vector<8x32xf32>
    %31 = arith.addf %28, %30 : vector<8x32xf32>
    %32 = vector.extract_strided_slice %31 {offsets = [0, 0], sizes = [8, 16], strides = [1, 1]} : vector<8x32xf32> to vector<8x16xf32>
    %c0_25 = arith.constant 0 : index
    %c0_26 = arith.constant 0 : index
    %33 = vector.load %arg12[%c0_25, %c0_26] : memref<8x16xf32, #tpu.memory_space<vmem>>, vector<8x16xf32>
    tpu.vector_store %arg12[%c0_25, %c0_26], %32 {strides = array<i32>} : memref<8x16xf32, #tpu.memory_space<vmem>>, vector<8x16xf32>,
    %34 = vector.extract_strided_slice %31 {offsets = [0, 16], sizes = [8, 16], strides = [1, 1]} : vector<8x32xf32> to vector<8x16xf32>
    %cst_27 = arith.constant 5.000000e-01 : f32
    %35 = vector.broadcast %cst_27 : f32 to vector<8x16xf32>
    %36 = arith.mulf %35, %34 : vector<8x16xf32>
    %37 = math.exp %36 : vector<8x16xf32>
    %cst_28 = arith.constant 9.99999997E-7 : f32
    %38 = vector.broadcast %cst_28 : f32 to vector<8x16xf32>
    %39 = arith.addf %38, %37 : vector<8x16xf32>
    %c0_29 = arith.constant 0 : index
    %c0_30 = arith.constant 0 : index
    %40 = vector.load %arg13[%c0_29, %c0_30] : memref<8x16xf32, #tpu.memory_space<vmem>>, vector<8x16xf32>
    tpu.vector_store %arg13[%c0_29, %c0_30], %39 {strides = array<i32>} : memref<8x16xf32, #tpu.memory_space<vmem>>, vector<8x16xf32>,
    return
  }
  func.func @transform_0(%arg0: i32) -> (i32, i32) {
    %c0_i32 = arith.constant 0 : i32
    %c0_i32_0 = arith.constant 0 : i32
    return %arg0, %c0_i32 : i32, i32
  }
  func.func @transform_1(%arg0: i32) -> (i32, i32) {
    %c0_i32 = arith.constant 0 : i32
    %c0_i32_0 = arith.constant 0 : i32
    return %arg0, %c0_i32 : i32, i32
  }
  func.func @transform_2(%arg0: i32) -> (i32, i32) {
    %c0_i32 = arith.constant 0 : i32
    %c0_i32_0 = arith.constant 0 : i32
    return %arg0, %c0_i32 : i32, i32
  }
  func.func @transform_3(%arg0: i32) -> (i32, i32) {
    %c0_i32 = arith.constant 0 : i32
    %c0_i32_0 = arith.constant 0 : i32
    %c0_i32_1 = arith.constant 0 : i32
    return %c0_i32, %c0_i32_0 : i32, i32
  }
  func.func @transform_4(%arg0: i32) -> (i32, i32) {
    %c0_i32 = arith.constant 0 : i32
    %c0_i32_0 = arith.constant 0 : i32
    %c0_i32_1 = arith.constant 0 : i32
    return %c0_i32, %c0_i32_0 : i32, i32
  }
  func.func @transform_5(%arg0: i32) -> (i32, i32) {
    %c0_i32 = arith.constant 0 : i32
    %c0_i32_0 = arith.constant 0 : i32
    %c0_i32_1 = arith.constant 0 : i32
    return %c0_i32, %c0_i32_0 : i32, i32
  }
  func.func @transform_6(%arg0: i32) -> (i32, i32) {
    %c0_i32 = arith.constant 0 : i32
    %c0_i32_0 = arith.constant 0 : i32
    %c0_i32_1 = arith.constant 0 : i32
    return %c0_i32, %c0_i32_0 : i32, i32
  }
  func.func @transform_7(%arg0: i32) -> (i32, i32) {
    %c0_i32 = arith.constant 0 : i32
    %c0_i32_0 = arith.constant 0 : i32
    %c0_i32_1 = arith.constant 0 : i32
    return %c0_i32, %c0_i32_0 : i32, i32
  }
  func.func @transform_8(%arg0: i32) -> (i32, i32) {
    %c0_i32 = arith.constant 0 : i32
    %c0_i32_0 = arith.constant 0 : i32
    %c0_i32_1 = arith.constant 0 : i32
    return %c0_i32, %c0_i32_0 : i32, i32
  }
  func.func @transform_9(%arg0: i32) -> (i32, i32) {
    %c0_i32 = arith.constant 0 : i32
    %c0_i32_0 = arith.constant 0 : i32
    %c0_i32_1 = arith.constant 0 : i32
    return %c0_i32, %c0_i32_0 : i32, i32
  }
  func.func @transform_10(%arg0: i32) -> (i32, i32) {
    %c0_i32 = arith.constant 0 : i32
    %c0_i32_0 = arith.constant 0 : i32
    %c0_i32_1 = arith.constant 0 : i32
    return %c0_i32, %c0_i32_0 : i32, i32
  }
  func.func @transform_11(%arg0: i32) -> (i32, i32) {
    %c0_i32 = arith.constant 0 : i32
    %c0_i32_0 = arith.constant 0 : i32
    return %arg0, %c0_i32 : i32, i32
  }
  func.func @transform_12(%arg0: i32) -> (i32, i32) {
    %c0_i32 = arith.constant 0 : i32
    %c0_i32_0 = arith.constant 0 : i32
    return %arg0, %c0_i32 : i32, i32
  }
}

</mosaic_0001>

<bundles_post_ra>
// kernel: fused_encoder_forward.1
= control target key start
LH: loop header
LB: loop body
LE: loop exit
PB: predicated region body
PF: predicated region fallthrough
CT: control target
= control target key end

     0   :  { %v877_v3 = vmov 0   ;;  %vm159_vm0 = vcmask 130048   ;;  %vm879_vm1 = vmmov 0   ;;  %vm576_vm2 = vcmask 523264   ;;  %s1395_s3 = inlined_call_operand.vmem [shape: f32[784,128], index: 3, kind: input, shape index: {}]   ;;  %s1396_s0 = inlined_call_operand.vmem [shape: f32[8,784], index: 0, kind: input, shape index: {}]   ;;  %s1397_s1 = inlined_call_operand.vmem [shape: f32[8,1], index: 1, kind: input, shape index: {}]   ;;  %s1398_s2 = inlined_call_operand.vmem [shape: f32[8,1], index: 2, kind: input, shape index: {}]   ;;  %s1399_s7 = inlined_call_operand.vmem [shape: f32[128,64], index: 7, kind: input, shape index: {}]   ;;  %s1400_s9 = inlined_call_operand.vmem [shape: f32[64,32], index: 9, kind: input, shape index: {}]   ;;  %s1401_s4 = inlined_call_operand.vmem [shape: f32[1,128], index: 4, kind: input, shape index: {}]   ;;  %s1402_s5 = inlined_call_operand.vmem [shape: f32[1,128], index: 5, kind: input, shape index: {}]   ;;  %s1403_s6 = inlined_call_operand.vmem [shape: f32[1,128], index: 6, kind: input, shape index: {}]   ;;  %s1404_s8 = inlined_call_operand.vmem [shape: f32[1,64], index: 8, kind: input, shape index: {}]   ;;  %s1405_s10 = inlined_call_operand.vmem [shape: f32[1,32], index: 10, kind: input, shape index: {}]   ;;  %s1406_s11 = inlined_call_operand.vmem [shape: f32[8,16], index: 11, kind: output, shape index: {0}]   ;;  %s1407_s12 = inlined_call_operand.vmem [shape: f32[8,16], index: 12, kind: output, shape index: {1}]  }
   0x1   :  { %v78_v0 = vld [vmem:[%s1395_s3 + $0xf8] sm:$0xff]  ;;  %v77_v2 = vld [vmem:[%s1395_s3 + $0xf0] sm:$0xff]  ;;  %874 = vset.pattern.permute.xlu0 %v877_v3  ;;  %v76_v7 = vld [vmem:[%s1395_s3 + $0xe8] sm:$0xff] }
   0x2   :  { %v62_v1 = vld [vmem:[%s1395_s3 + $0x78] sm:$0xff]  ;;  %675 = vmatprep.subr.mxu0 %v78_v0  ;;  %v61_v5 = vld [vmem:[%s1395_s3 + $0x70] sm:$0xff]  ;;  %v60_v9 = vld [vmem:[%s1395_s3 + $0x68] sm:$0xff] }
   0x3   :  { %v110_v4 = vld [vmem:[%s1395_s3 + $0x1f8] sm:$0xff]  ;;  %676 = vmatpush3.msra.mxu0 %v62_v1  ;;  %v109_v8 = vld [vmem:[%s1395_s3 + $0x1f0] sm:$0xff]  ;;  %v108_v11 = vld [vmem:[%s1395_s3 + $0x1e8] sm:$0xff] }
   0x4   :  { %v94_v6 = vld [vmem:[%s1395_s3 + $0x178] sm:$0xff]  ;;  %710 = vmatprep.subr.mxu1 %v110_v4  ;;  %677 = vmatprep.subr.mxu0 %v77_v2  ;;  %v93_v10 = vld [vmem:[%s1395_s3 + $0x170] sm:$0xff]  ;;  %v75_v12 = vld [vmem:[%s1395_s3 + $0xe0] sm:$0xff] }
   0x5   :  { %711 = vmatpush3.msra.mxu1 %v94_v6  ;;  %678 = vmatpush3.msra.mxu0 %v61_v5  ;;  %v92_v13 = vld [vmem:[%s1395_s3 + $0x168] sm:$0xff]  ;;  %v59_v14 = vld [vmem:[%s1395_s3 + $0x60] sm:$0xff]  ;;  %v74_v16 = vld [vmem:[%s1395_s3 + $0xd8] sm:$0xff] }
   0x6   :  { %712 = vmatprep.subr.mxu1 %v109_v8  ;;  %679 = vmatprep.subr.mxu0 %v76_v7  ;;  %v107_v15 = vld [vmem:[%s1395_s3 + $0x1e0] sm:$0xff]  ;;  %v58_v18 = vld [vmem:[%s1395_s3 + $0x58] sm:$0xff]  ;;  %v73_v20 = vld [vmem:[%s1395_s3 + $0xd0] sm:$0xff] }
   0x7   :  { %713 = vmatpush3.msra.mxu1 %v93_v10  ;;  %680 = vmatpush3.msra.mxu0 %v60_v9  ;;  %v91_v17 = vld [vmem:[%s1395_s3 + $0x160] sm:$0xff]  ;;  %v106_v19 = vld [vmem:[%s1395_s3 + $0x1d8] sm:$0xff]  ;;  %v57_v22 = vld [vmem:[%s1395_s3 + $0x50] sm:$0xff] }
   0x8   :  { %714 = vmatprep.subr.mxu1 %v108_v11  ;;  %681 = vmatprep.subr.mxu0 %v75_v12  ;;  %v90_v21 = vld [vmem:[%s1395_s3 + $0x158] sm:$0xff]  ;;  %v105_v23 = vld [vmem:[%s1395_s3 + $0x1d0] sm:$0xff]  ;;  %v72_v24 = vld [vmem:[%s1395_s3 + $0xc8] sm:$0xff] }
   0x9   :  { %715 = vmatpush3.msra.mxu1 %v92_v13  ;;  %682 = vmatpush3.msra.mxu0 %v59_v14  ;;  %v89_v25 = vld [vmem:[%s1395_s3 + $0x150] sm:$0xff]  ;;  %v56_v26 = vld [vmem:[%s1395_s3 + $0x48] sm:$0xff]  ;;  %v71_v28 = vld [vmem:[%s1395_s3 + $0xc0] sm:$0xff] }
   0xa   :  { %716 = vmatprep.subr.mxu1 %v107_v15  ;;  %683 = vmatprep.subr.mxu0 %v74_v16  ;;  %v104_v27 = vld [vmem:[%s1395_s3 + $0x1c8] sm:$0xff]  ;;  %v55_v30 = vld [vmem:[%s1395_s3 + $0x40] sm:$0xff]  ;;  %v70_v32 = vld [vmem:[%s1395_s3 + $0xb8] sm:$0xff]  ;;  %v878_v15 = vmov 0.0  }
   0xb   :  { %717 = vmatpush3.msra.mxu1 %v91_v17  ;;  %684 = vmatpush3.msra.mxu0 %v58_v18  ;;  %v88_v29 = vld [vmem:[%s1395_s3 + $0x148] sm:$0xff]  ;;  %v103_v31 = vld [vmem:[%s1395_s3 + $0x1c0] sm:$0xff]  ;;  %v54_v34 = vld [vmem:[%s1395_s3 + $0x38] sm:$0xff] }
   0xc   :  { %718 = vmatprep.subr.mxu1 %v106_v19  ;;  %685 = vmatprep.subr.mxu0 %v73_v20  ;;  %v87_v33 = vld [vmem:[%s1395_s3 + $0x140] sm:$0xff]  ;;  %v102_v35 = vld [vmem:[%s1395_s3 + $0x1b8] sm:$0xff]  ;;  %v69_v36 = vld [vmem:[%s1395_s3 + $0xb0] sm:$0xff] }
   0xd   :  { %719 = vmatpush3.msra.mxu1 %v90_v21  ;;  %686 = vmatpush3.msra.mxu0 %v57_v22  ;;  %v86_v37 = vld [vmem:[%s1395_s3 + $0x138] sm:$0xff]  ;;  %v53_v38 = vld [vmem:[%s1395_s3 + $0x30] sm:$0xff]  ;;  %v68_v40 = vld [vmem:[%s1395_s3 + $0xa8] sm:$0xff] }
   0xe   :  { %720 = vmatprep.subr.mxu1 %v105_v23  ;;  %687 = vmatprep.subr.mxu0 %v72_v24  ;;  %v101_v39 = vld [vmem:[%s1395_s3 + $0x1b0] sm:$0xff]  ;;  %v52_v42 = vld [vmem:[%s1395_s3 + $0x28] sm:$0xff]  ;;  %v67_v44 = vld [vmem:[%s1395_s3 + $0xa0] sm:$0xff] }
   0xf   :  { %721 = vmatpush3.msra.mxu1 %v89_v25  ;;  %688 = vmatpush3.msra.mxu0 %v56_v26  ;;  %v85_v41 = vld [vmem:[%s1395_s3 + $0x130] sm:$0xff]  ;;  %v100_v43 = vld [vmem:[%s1395_s3 + $0x1a8] sm:$0xff]  ;;  %v51_v46 = vld [vmem:[%s1395_s3 + $0x20] sm:$0xff] }
  0x10   :  { %722 = vmatprep.subr.mxu1 %v104_v27  ;;  %689 = vmatprep.subr.mxu0 %v71_v28  ;;  %v84_v45 = vld [vmem:[%s1395_s3 + $0x128] sm:$0xff]  ;;  %v99_v47 = vld [vmem:[%s1395_s3 + $0x1a0] sm:$0xff]  ;;  %v66_v48 = vld [vmem:[%s1395_s3 + $0x98] sm:$0xff] }
  0x11   :  { %723 = vmatpush3.msra.mxu1 %v88_v29  ;;  %690 = vmatpush3.msra.mxu0 %v55_v30  ;;  %v83_v49 = vld [vmem:[%s1395_s3 + $0x120] sm:$0xff]  ;;  %v50_v50 = vld [vmem:[%s1395_s3 + $0x18] sm:$0xff]  ;;  %v65_v52 = vld [vmem:[%s1395_s3 + $0x90] sm:$0xff] }
  0x12   :  { %724 = vmatprep.subr.mxu1 %v103_v31  ;;  %691 = vmatprep.subr.mxu0 %v70_v32  ;;  %v98_v51 = vld [vmem:[%s1395_s3 + $0x198] sm:$0xff]  ;;  %v49_v54 = vld [vmem:[%s1395_s3 + $0x10] sm:$0xff]  ;;  %v64_v56 = vld [vmem:[%s1395_s3 + $0x88] sm:$0xff] }
  0x13   :  { %725 = vmatpush3.msra.mxu1 %v87_v33  ;;  %692 = vmatpush3.msra.mxu0 %v54_v34  ;;  %v82_v53 = vld [vmem:[%s1395_s3 + $0x118] sm:$0xff]  ;;  %v97_v55 = vld [vmem:[%s1395_s3 + $0x190] sm:$0xff]  ;;  %v48_v58 = vld [vmem:[%s1395_s3 + $0x8] sm:$0xff] }
  0x14   :  { %726 = vmatprep.subr.mxu1 %v102_v35  ;;  %693 = vmatprep.subr.mxu0 %v69_v36  ;;  %v81_v57 = vld [vmem:[%s1395_s3 + $0x110] sm:$0xff]  ;;  %v96_v59 = vld [vmem:[%s1395_s3 + $0x188] sm:$0xff]  ;;  %v63_v60 = vld [vmem:[%s1395_s3 + $0x80] sm:$0xff] }
  0x15   :  { %727 = vmatpush3.msra.mxu1 %v86_v37  ;;  %694 = vmatpush3.msra.mxu0 %v53_v38  ;;  %v41_v61 = vld [vmem:[%s1396_s0 + $0x8] sm:$0xff]  ;;  %v47_v62 = vld [vmem:[%s1395_s3] sm:$0xff]  ;;  %v142_v2 = vld [vmem:[%s1395_s3 + $0x2f8] sm:$0xff] }
  0x16   :  { %728 = vmatprep.subr.mxu1 %v101_v39  ;;  %695 = vmatprep.subr.mxu0 %v68_v40  ;;  %v80_v63 = vld [vmem:[%s1395_s3 + $0x108] sm:$0xff]  ;;  %v40_v0 = vld [vmem:[%s1396_s0] sm:$0xff]  ;;  %v43_v4 = vld [vmem:[%s1396_s0 + $0x18] sm:$0xff] }
  0x17   :  { %729 = vmatpush3.msra.mxu1 %v85_v41  ;;  %696 = vmatpush3.msra.mxu0 %v52_v42  ;;  %v95_v1 = vld [vmem:[%s1395_s3 + $0x180] sm:$0xff]  ;;  %v126_v5 = vld [vmem:[%s1395_s3 + $0x278] sm:$0xff]  ;;  %v42_v6 = vld [vmem:[%s1396_s0 + $0x10] sm:$0xff] }
  0x18   :  { %730 = vmatprep.subr.mxu1 %v100_v43  ;;  %697 = vmatprep.subr.mxu0 %v67_v44  ;;  %v79_v3 = vld [vmem:[%s1395_s3 + $0x100] sm:$0xff]  ;;  %v141_v7 = vld [vmem:[%s1395_s3 + $0x2f0] sm:$0xff]  ;;  %v45_v9 = vld [vmem:[%s1396_s0 + $0x28] sm:$0xff] }
  0x19   :  { %731 = vmatpush3.msra.mxu1 %v84_v45  ;;  %698 = vmatpush3.msra.mxu0 %v51_v46  ;;  %v125_v8 = vld [vmem:[%s1395_s3 + $0x270] sm:$0xff]  ;;  %v140_v10 = vld [vmem:[%s1395_s3 + $0x2e8] sm:$0xff]  ;;  %v139_v13 = vld [vmem:[%s1395_s3 + $0x2e0] sm:$0xff] }
  0x1a   :  { %732 = vmatprep.subr.mxu1 %v99_v47  ;;  %699 = vmatprep.subr.mxu0 %v66_v48  ;;  %v124_v11 = vld [vmem:[%s1395_s3 + $0x268] sm:$0xff]  ;;  %v123_v14 = vld [vmem:[%s1395_s3 + $0x260] sm:$0xff]  ;;  %v138_v17 = vld [vmem:[%s1395_s3 + $0x2d8] sm:$0xff] }
  0x1b   :  { %733 = vmatpush3.msra.mxu1 %v83_v49  ;;  %700 = vmatpush3.msra.mxu0 %v50_v50  ;;  %v144_v12 = vld [vmem:[%s1395_s3 + $0x308] sm:$0xff]  ;;  %v143_v16 = vld [vmem:[%s1395_s3 + $0x300] sm:$0xff]  ;;  %v122_v18 = vld [vmem:[%s1395_s3 + $0x258] sm:$0xff] }
  0x1c   :  { %734 = vmatprep.subr.mxu1 %v98_v51  ;;  %701 = vmatprep.subr.mxu0 %v65_v52  ;;  %v46_v19 = vld [vmem:[%s1396_s0 + $0x30] sm:$0xff]  ;;  %v145_v21 = vld [vmem:[%s1397_s1] sm:$0xff]  ;;  %v136_v23 = vld [vmem:[%s1395_s3 + $0x2c8] sm:$0xff] }
  0x1d   :  { %735 = vmatpush3.msra.mxu1 %v82_v53  ;;  %702 = vmatpush3.msra.mxu0 %v49_v54  ;;  %v137_v20 = vld [vmem:[%s1395_s3 + $0x2d0] sm:$0xff]  ;;  %v120_v24 = vld [vmem:[%s1395_s3 + $0x248] sm:$0xff]  ;;  %v135_v25 = vld [vmem:[%s1395_s3 + $0x2c0] sm:$0xff] }
  0x1e   :  { %736 = vmatprep.subr.mxu1 %v97_v55  ;;  %703 = vmatprep.subr.mxu0 %v64_v56  ;;  %v121_v22 = vld [vmem:[%s1395_s3 + $0x250] sm:$0xff]  ;;  %v443_v26 = vld [vmem:[%s1398_s2] sm:$0xff]  ;;  %v134_v28 = vld [vmem:[%s1395_s3 + $0x2b8] sm:$0xff] }
  0x1f   :  { %737 = vmatpush3.msra.mxu1 %v81_v57  ;;  %704 = vmatpush3.msra.mxu0 %v48_v58  ;;  %v119_v27 = vld [vmem:[%s1395_s3 + $0x240] sm:$0xff]  ;;  %v118_v29 = vld [vmem:[%s1395_s3 + $0x238] sm:$0xff]  ;;  %v133_v30 = vld [vmem:[%s1395_s3 + $0x2b0] sm:$0xff] }
  0x20   :  { %738 = vmatprep.subr.mxu1 %v96_v59  ;;  %705 = vmatprep.subr.mxu0 %v63_v60  ;;  %v117_v31 = vld [vmem:[%s1395_s3 + $0x230] sm:$0xff]  ;;  %v132_v32 = vld [vmem:[%s1395_s3 + $0x2a8] sm:$0xff]  ;;  %v131_v34 = vld [vmem:[%s1395_s3 + $0x2a0] sm:$0xff] }
  0x21   :  { %227 = vmatprep.mubr.f32.mxu0 %v41_v61  ;;  %706 = vmatpush3.msra.mxu0 %v47_v62  ;;  %v116_v33 = vld [vmem:[%s1395_s3 + $0x228] sm:$0xff]  ;;  %v115_v35 = vld [vmem:[%s1395_s3 + $0x220] sm:$0xff]  ;;  %v130_v36 = vld [vmem:[%s1395_s3 + $0x298] sm:$0xff] }
  0x22   :  { %739 = vmatpush3.msra.mxu1 %v80_v63  ;;  %228 = vmatmul.mubr.f32.vlgmr.msra.gmra.mxu0 %v40_v0  ;;  %v114_v37 = vld [vmem:[%s1395_s3 + $0x218] sm:$0xff]  ;;  %v129_v38 = vld [vmem:[%s1395_s3 + $0x290] sm:$0xff]  ;;  %v128_v40 = vld [vmem:[%s1395_s3 + $0x288] sm:$0xff] }
  0x23   :  { %740 = vmatprep.subr.mxu1 %v95_v1  ;;  %745 = vmatprep.subr.mxu0 %v142_v2  ;;  %v113_v39 = vld [vmem:[%s1395_s3 + $0x210] sm:$0xff]  ;;  %v112_v41 = vld [vmem:[%s1395_s3 + $0x208] sm:$0xff]  ;;  %v127_v42 = vld [vmem:[%s1395_s3 + $0x280] sm:$0xff] }
  0x24   :  { %741 = vmatpush3.msra.mxu1 %v79_v3  ;;  %297 = vmatprep.mubr.f32.mxu1 %v43_v4  ;;  %v111_v43 = vld [vmem:[%s1395_s3 + $0x200] sm:$0xff]  ;;  %v482_v45 = vld [vmem:[%s1399_s7 + $0x78] sm:$0xff]  ;;  %v481_v46 = vld [vmem:[%s1399_s7 + $0x70] sm:$0xff] }
  0x25   :  { %746 = vmatpush3.msra.mxu0 %v126_v5  ;;  %298 = vmatmul.mubr.f32.vlgmr.msra.gmra.mxu1 %v42_v6  ;;  %v44_v44 = vld [vmem:[%s1396_s0 + $0x20] sm:$0xff]  ;;  %v480_v47 = vld [vmem:[%s1399_s7 + $0x68] sm:$0xff]  ;;  %v478_v49 = vld [vmem:[%s1399_s7 + $0x58] sm:$0xff] }
  0x26   :  { %747 = vmatprep.subr.mxu0 %v141_v7  ;;  %367 = vmatprep.mubr.f32.mxu0 %v45_v9  ;;  %v479_v48 = vld [vmem:[%s1399_s7 + $0x60] sm:$0xff]  ;;  %v477_v50 = vld [vmem:[%s1399_s7 + $0x50] sm:$0xff]  ;;  %v476_v51 = vld [vmem:[%s1399_s7 + $0x48] sm:$0xff] }
  0x27   :  { %748 = vmatpush3.msra.mxu0 %v125_v8  ;;  %809 = vmatprep.subr.mxu1 %v878_v15  ;;  %v475_v52 = vld [vmem:[%s1399_s7 + $0x40] sm:$0xff]  ;;  %v474_v53 = vld [vmem:[%s1399_s7 + $0x38] sm:$0xff]  ;;  %v473_v54 = vld [vmem:[%s1399_s7 + $0x30] sm:$0xff] }
  0x28   :  { %749 = vmatprep.subr.mxu0 %v140_v10  ;;  %810 = vmatpush3.msra.mxu1 %v144_v12  ;;  %v472_v55 = vld [vmem:[%s1399_s7 + $0x28] sm:$0xff]  ;;  %v471_v56 = vld [vmem:[%s1399_s7 + $0x20] sm:$0xff]  ;;  %v470_v57 = vld [vmem:[%s1399_s7 + $0x18] sm:$0xff] }
  0x29   :  { %750 = vmatpush3.msra.mxu0 %v124_v11  ;;  %811 = vmatprep.subr.mxu1 %v878_v15  ;;  %v469_v58 = vld [vmem:[%s1399_s7 + $0x10] sm:$0xff]  ;;  %v468_v59 = vld [vmem:[%s1399_s7 + $0x8] sm:$0xff]  ;;  %v467_v60 = vld [vmem:[%s1399_s7] sm:$0xff] }
  0x2a   :  { %751 = vmatprep.subr.mxu0 %v139_v13  ;;  %812 = vmatpush3.msra.mxu1 %v143_v16  ;;  %v568_v61 = vld [vmem:[%s1400_s9 + $0x38] sm:$0xff]  ;;  %v567_v62 = vld [vmem:[%s1400_s9 + $0x30] sm:$0xff]  ;;  %v566_v63 = vld [vmem:[%s1400_s9 + $0x28] sm:$0xff] }
  0x2b   :  { %752 = vmatpush3.msra.mxu0 %v123_v14  ;;  %813 = vmatprep.mubr.msk.f32.mxu1 %vm879_vm1, %v878_v15  ;;  %v565_v0 = vld [vmem:[%s1400_s9 + $0x20] sm:$0xff]  ;;  %v564_v1 = vld [vmem:[%s1400_s9 + $0x18] sm:$0xff] }
  0x2c   :  { %753 = vmatprep.subr.mxu0 %v138_v17  ;;  %814 = vmatmul.mubr.msk.f32.vlgmr.msra.gmra.mxu1 %vm159_vm0, %v46_v19  ;;  %v668_v7 = vld [vmem:[%s1401_s4] ss:$0 sm:$0xff] }
  0x2d   :  { %754 = vmatpush3.msra.mxu0 %v122_v18  ;;  %149 = vperm.xlu0 %874, %v145_v21   ;;  %v670_v19 = vld [vmem:[%s1402_s5] ss:$0 sm:$0xff] }
  0x2e   :  { %755 = vmatprep.subr.mxu0 %v137_v20  ;;  %816 = vmatprep.subr.mxu1 %v878_v15 }
  0x2f   :  { %756 = vmatpush3.msra.mxu0 %v121_v22  ;;  %848 = vmatprep.mubr.msk.f32.mxu1 %vm879_vm1, %v878_v15 }
  0x30   :  { %757 = vmatprep.subr.mxu0 %v136_v23  ;;  %817 = vmatpush3.msra.mxu1 %v482_v45 }
  0x31   :  { %758 = vmatpush3.msra.mxu0 %v120_v24  ;;  %447 = vperm.xlu0 %874, %v443_v26   ;;  %v671_v24 = vld [vmem:[%s1403_s6] ss:$0 sm:$0xff] }
  0x32   :  { %759 = vmatprep.subr.mxu0 %v135_v25  ;;  %818 = vmatprep.subr.mxu1 %v878_v15 }
  0x33   :  { %760 = vmatpush3.msra.mxu0 %v119_v27  ;;  %819 = vmatpush3.msra.mxu1 %v481_v46 }
  0x34   :  { %761 = vmatprep.subr.mxu0 %v134_v28  ;;  %820 = vmatprep.subr.mxu1 %v878_v15  ;;  %v563_v28 = vld [vmem:[%s1400_s9 + $0x10] sm:$0xff] }
  0x35   :  { %762 = vmatpush3.msra.mxu0 %v118_v29  ;;  %821 = vmatpush3.msra.mxu1 %v480_v47  ;;  %v562_v29 = vld [vmem:[%s1400_s9 + $0x8] sm:$0xff] }
  0x36   :  { %763 = vmatprep.subr.mxu0 %v133_v30  ;;  %822 = vmatprep.subr.mxu1 %v878_v15  ;;  %v561_v30 = vld [vmem:[%s1400_s9] sm:$0xff] }
  0x37   :  { %764 = vmatpush3.msra.mxu0 %v117_v31  ;;  %823 = vmatpush3.msra.mxu1 %v479_v48  ;;  %v672_v31 = vld [vmem:[%s1404_s8] ss:$0 sm:$0xff]  ;;  %s880_s8 = smov 112  }
  0x38   :  { %765 = vmatprep.subr.mxu0 %v132_v32  ;;  %824 = vmatprep.subr.mxu1 %v878_v15 }
  0x39   :  { %766 = vmatpush3.msra.mxu0 %v116_v33  ;;  %825 = vmatpush3.msra.mxu1 %v478_v49 }
  0x3a   :  { %767 = vmatprep.subr.mxu0 %v131_v34  ;;  %826 = vmatprep.subr.mxu1 %v878_v15 }
  0x3b   :  { %768 = vmatpush3.msra.mxu0 %v115_v35  ;;  %827 = vmatpush3.msra.mxu1 %v477_v50 }
  0x3c   :  { %769 = vmatprep.subr.mxu0 %v130_v36  ;;  %828 = vmatprep.subr.mxu1 %v878_v15  ;;  %v673_v36 = vld [vmem:[%s1405_s10] ss:$0 sm:$0xff] }
  0x3d   :  { %770 = vmatpush3.msra.mxu0 %v114_v37  ;;  %829 = vmatpush3.msra.mxu1 %v476_v51 }
  0x3e   :  { %771 = vmatprep.subr.mxu0 %v129_v38  ;;  %830 = vmatprep.subr.mxu1 %v878_v15 }
  0x3f   :  { %772 = vmatpush3.msra.mxu0 %v113_v39  ;;  %831 = vmatpush3.msra.mxu1 %v475_v52 }
  0x40   :  { %773 = vmatprep.subr.mxu0 %v128_v40  ;;  %832 = vmatprep.subr.mxu1 %v878_v15 }
  0x41   :  { %774 = vmatpush3.msra.mxu0 %v112_v41  ;;  %833 = vmatpush3.msra.mxu1 %v474_v53 }
  0x42   :  { %775 = vmatprep.subr.mxu0 %v127_v42  ;;  %834 = vmatprep.subr.mxu1 %v878_v15 }
  0x43   :  { %776 = vmatpush3.msra.mxu0 %v111_v43  ;;  %835 = vmatpush3.msra.mxu1 %v473_v54 }
  0x44   :  { %368 = vmatmul.mubr.f32.vlgmr.msra.gmra.mxu0 %v44_v44  ;;  %851 = vmatprep.subr.mxu0 %v878_v15 }
  0x45   :  { %867 = vmatprep.mubr.msk.f32.mxu0 %vm879_vm1, %v878_v15  ;;  %836 = vmatprep.subr.mxu1 %v878_v15 }
  0x46   :  { %837 = vmatpush3.msra.mxu1 %v472_v55  ;;  %852 = vmatpush3.msra.mxu0 %v568_v61 }
  0x47   :  { %838 = vmatprep.subr.mxu1 %v878_v15  ;;  %853 = vmatprep.subr.mxu0 %v878_v15 }
  0x48   :  { %839 = vmatpush3.msra.mxu1 %v471_v56  ;;  %854 = vmatpush3.msra.mxu0 %v567_v62 }
  0x49   :  { %840 = vmatprep.subr.mxu1 %v878_v15  ;;  %855 = vmatprep.subr.mxu0 %v878_v15 }
  0x4a   :  { %841 = vmatpush3.msra.mxu1 %v470_v57  ;;  %856 = vmatpush3.msra.mxu0 %v566_v63 }
  0x4b   :  { %842 = vmatprep.subr.mxu1 %v878_v15  ;;  %857 = vmatprep.subr.mxu0 %v878_v15 }
  0x4c   :  { %843 = vmatpush3.msra.mxu1 %v469_v58  ;;  %858 = vmatpush3.msra.mxu0 %v565_v0 }
  0x4d   :  { %844 = vmatprep.subr.mxu1 %v878_v15  ;;  %859 = vmatprep.subr.mxu0 %v878_v15 }
  0x4e   :  { %845 = vmatpush3.msra.mxu1 %v468_v59  ;;  %860 = vmatpush3.msra.mxu0 %v564_v1 }
  0x4f   :  { %846 = vmatprep.subr.mxu1 %v878_v15  ;;  %861 = vmatprep.subr.mxu0 %v878_v15 }
  0x50   :  { %847 = vmatpush3.msra.mxu1 %v467_v60  ;;  %862 = vmatpush3.msra.mxu0 %v563_v28 }
  0x51   :  { %863 = vmatprep.subr.mxu0 %v878_v15 }
  0x52   :  { %864 = vmatpush3.msra.mxu0 %v562_v29 }
  0x53   :  { %865 = vmatprep.subr.mxu0 %v878_v15 }
  0x54   :  { %866 = vmatpush3.msra.mxu0 %v561_v30 }
  0xa8   :  { %v150_v8 = vpop.permute.xlu0 %149 }
  0xa9   :  { %v158_v10 = vmul.f32 %v668_v7, %v150_v8 }
  0xac   :  { %v448_v20 = vpop.permute.xlu0 %447 }
  0xad   :  { %v456_v22 = vmul.f32 %v670_v19, %v448_v20 }
  0xe2   :  { %v707_v6 = vpop.f32.mrf.mxu0 }
  0xe4   :  { %v708_v9 = vpop.f32.mrf.mxu0 }
  0xe5   :  { %v742_v2 = vpop.f32.mrf.mxu1  ;;  %v709_v11 = vadd.f32 %v708_v9, %v707_v6 }
  0xe7   :  { %v743_v3 = vpop.f32.mrf.mxu1  ;;  %v230_v12 = vadd.f32 %v709_v11, %v158_v10 }
  0xe8   :  { %v744_v13 = vadd.f32 %v743_v3, %v742_v2 }
  0xea   :  { %v300_v17 = vadd.f32 %v744_v13, %v230_v12 }
  0xec   :  { %v439_v4 = vpop.f32.mrf.mxu1 }
  0xee   :  { %v815_v5 = vpop.f32.mrf.mxu1 }
 0x104   :  { %v777_v14 = vpop.f32.mrf.mxu0 }
 0x106   :  { %v778_v16 = vpop.f32.mrf.mxu0 }
 0x107   :  { %v779_v18 = vadd.f32 %v778_v16, %v777_v14 }
 0x109   :  { %v370_v21 = vadd.f32 %v779_v18, %v300_v17 }
 0x10b   :  { %v440_v23 = vadd.f32 %v439_v4, %v370_v21 }
 0x10d   :  { %v457_v25 = vadd.f32 %v456_v22, %v440_v23 }
 0x10f   :  { %v465_v26 = vadd.f32 %v671_v24, %v457_v25 }
 0x111   :  { %v466_v27 = vmax.f32 %v465_v26, 0.0 }
 0x113   :  { %849 = vmatmul.mubr.f32.vlgmr.msra.gmra.mxu1 %v466_v27 }
 0x1d3   :  { %v556_v32 = vpop.f32.mrf.mxu1 }
 0x1d4   :  { %v557_v33 = vadd.f32 %v672_v31, %v556_v32 }
 0x1d5   :  { %v850_v34 = vpop.f32.mrf.mxu1 }
 0x1d6   :  { %v560_v35 = vmax.f32 %v557_v33, 0.0 }
 0x1d8   :  { %868 = vmatmul.mubr.msk.f32.vlgmr.msra.gmra.mxu0 %vm576_vm2, %v560_v35 }
 0x298   :  { %v646_v15 = vpop.f32.mrf.mxu0 }
 0x299   :  { %v647_v37 = vadd.f32 %v673_v36, %v646_v15 }
 0x29a   :  { %v869_v38 = vpop.f32.mrf.mxu0 }
 0x29b   :  { %650 = vst.msk [vmem:[%s1406_s11] sm:$0xff] %vm159_vm0, %v647_v37  ;;  %v651_v39 = vmul.f32 0.5, %v647_v37 }
 0x29d   :  { %v652_v40 = vmul.f32 1.442695, %v651_v39 }
 0x29f   :  { %875 = vpow2.f32 %v652_v40 }
 0x2ac   :  { %v876_v41 = vpop.eup %875 }
 0x2ad   :  { %v654_v42 = vadd.f32 1e-06, %v876_v41 }
 0x2af   :  { %656 = vrot.lane.b32.xlu1 %v654_v42, %s880_s8 }
 0x321   :  { %v657_v43 = vpop.permute.xlu1 %656 }
 0x322   :  { %659 = vst.msk [vmem:[%s1407_s12] sm:$0xff] %vm159_vm0, %v657_v43 }

</bundles_post_ra>
